<compile_context>
chip_gen: v7x
topology: tpu7x:2x2x1
jax: 0.10.0
libtpu: 0.0.40
codegen_flags: <defaults>
</compile_context>

<pallas_src>
import functools

import jax
import jax.numpy as jnp
from jax.experimental import pallas as pl
from jax.experimental.pallas import tpu as pltpu

LANE = 128  # TPU vreg lane width


def _round_up(x: int, m: int) -> int:
    return ((x + m - 1) // m) * m


@functools.lru_cache(maxsize=None)
def _vmem_capacity_bytes() -> int:
    """Physical per-core VMEM; falls back to 128 MiB if the query is unavailable."""
    try:
        info = pltpu.get_tpu_info()
        cap = getattr(info, "vmem_capacity_bytes", None)
        if cap:
            return int(cap)
    except Exception:
        pass
    return 128 * 1024 * 1024


# ---------------------------------------------------------------------------
# Kernels
# ---------------------------------------------------------------------------
def mlp_fused_kernel(x_ref, w1t_ref, w2t_ref, o_ref, *, chunk):
    # x_ref   : (tm, K)        input dtype (f32); downcast to bf16 in-kernel (VPU)
    # w1t_ref : (K, H_pad)     bf16, VMEM-resident, single-buffered
    # w2t_ref : (H_pad, N_pad) bf16, VMEM-resident, single-buffered
    # o_ref   : (tm, N_pad)    output dtype, lane-dense store
    w1 = w1t_ref[...]
    w2 = w2t_ref[...]
    tm = x_ref.shape[0]
    n_chunks = tm // chunk  # wrapper guarantees tm % chunk == 0

    def one(r0, rows):
        xb = x_ref[pl.ds(r0, rows), :].astype(w1.dtype)
        h = jnp.tanh(jnp.dot(xb, w1, preferred_element_type=jnp.float32))  # EUP
        o_ref[pl.ds(r0, rows), :] = jnp.dot(
            h.astype(w2.dtype), w2,
            preferred_element_type=jnp.float32).astype(o_ref.dtype)

    if n_chunks <= 1:
        one(0, tm)
    else:
        # Row-chunked so the MXU (dot of chunk i) overlaps the EUP (tanh of
        # chunk i+1); also bounds the live f32 intermediate.
        def body(c, carry):
            one(pl.multiple_of(c * chunk, chunk), chunk)
            return carry
        jax.lax.fori_loop(0, n_chunks, body, 0, unroll=True)


def mlp_htiled_kernel(x_ref, w1t_ref, w2t_ref, o_ref, acc_ref):
    # Fallback for weights too big to keep fully VMEM-resident: stream the
    # hidden dim in th-wide slabs, accumulate the second matmul in f32 scratch.
    #   out = sum_j tanh(x @ W1t[:, j]) @ W2t[j, :]
    # (exact because tanh is elementwise over the hidden dim and padded hidden
    #  columns/rows are zero).
    j = pl.program_id(1)

    @pl.when(j == 0)
    def _():
        acc_ref[...] = jnp.zeros_like(acc_ref)

    xb = x_ref[...].astype(w1t_ref.dtype)
    h = jnp.tanh(jnp.dot(xb, w1t_ref[...], preferred_element_type=jnp.float32))
    acc_ref[...] += jnp.dot(h.astype(w2t_ref.dtype), w2t_ref[...],
                            preferred_element_type=jnp.float32)

    @pl.when(j == pl.num_programs(1) - 1)
    def _():
        o_ref[...] = acc_ref[...].astype(o_ref.dtype)


# ---------------------------------------------------------------------------
# One-time parameter preparation (hoisted out of the hot path)
# ---------------------------------------------------------------------------
def prepare_params(w1, w2, compute_dtype=jnp.bfloat16):
    """w1: (2*D_in, D_in), w2: (D_out, 2*D_in) in PyTorch (out, in) layout.

    Returns transposed bf16 weights with the hidden and output dims zero-padded
    to 128-lane multiples (K = D_in is left unpadded so the activation never
    needs a pad/copy):
      w1t_p: (D_in,  H_pad),  w2t_p: (H_pad, N_pad)
    Zero padding is exact: padded hidden columns give tanh(0)=0 which hits zero
    W2 rows; padded output columns are sliced off.
    """
    h_dim, d_in = w1.shape
    d_out, h_dim2 = w2.shape
    assert h_dim == h_dim2
    h_pad = _round_up(h_dim, LANE)
    n_pad = _round_up(d_out, LANE)

    w1t_p = jnp.zeros((d_in, h_pad), compute_dtype).at[:, :h_dim].set(
        w1.T.astype(compute_dtype))
    w2t_p = jnp.zeros((h_pad, n_pad), compute_dtype).at[:h_dim, :d_out].set(
        w2.T.astype(compute_dtype))
    return w1t_p, w2t_p


# ---------------------------------------------------------------------------
# Forward wrapper
# ---------------------------------------------------------------------------
def mlp_forward(x, w1t_p, w2t_p, *, d_out, tm=None, chunk_rows=None,
                force_tiled=False):
    """x: (B, D_in). Weights from prepare_params. Returns (B, d_out) in x.dtype."""
    B, d_in = x.shape
    k_w, h_pad = w1t_p.shape
    h_pad2, n_pad = w2t_p.shape
    assert k_w == d_in and h_pad == h_pad2 and d_out <= n_pad

    cap = _vmem_capacity_bytes()
    # ~48 MiB headroom'd limit on 64-MiB-VMEM chips (v7x), ~96 MiB on 128-MiB chips.
    vmem_limit = min(int(cap * 3 // 4), 96 * 1024 * 1024)

    # Batch tile: big (fewer grid steps, better HBM roofline) but never bigger
    # than the batch; 16-row granularity (bf16-friendly). Ragged last tile is
    # handled by Pallas masked edge writeback (no jnp.pad of x).
    if tm is None:
        tm = 256 if cap <= 64 * 1024 * 1024 else 512
    tm = max(8, min(tm, B))
    if tm < B:
        tm = _round_up(tm, 16)
    grid_m = pl.cdiv(B, tm)
    # TODO(synk): on v7x (2 TCs) prefer an even grid_m for a balanced megacore split.

    w_itemsize = jnp.dtype(w1t_p.dtype).itemsize
    weights_bytes = (w1t_p.size + w2t_p.size) * w_itemsize
    out_dtype = x.dtype

    cost = pl.CostEstimate(
        flops=2 * B * d_in * h_pad + 2 * B * h_pad * n_pad,
        transcendentals=B * h_pad,
        bytes_accessed=(x.size * jnp.dtype(x.dtype).itemsize
                        + weights_bytes
                        + B * n_pad * jnp.dtype(out_dtype).itemsize),
    )

    use_tiled = force_tiled or (weights_bytes > cap // 3)

    if not use_tiled:
        # --- Fused path: both weights VMEM-resident, single-buffered. ---
        if chunk_rows is None:
            chunk_rows = 128 if tm % 128 == 0 else (64 if tm % 64 == 0 else tm)
        assert tm % chunk_rows == 0, "chunk_rows must divide the batch tile"
        out_p = pl.pallas_call(
            functools.partial(mlp_fused_kernel, chunk=chunk_rows),
            out_shape=jax.ShapeDtypeStruct((B, n_pad), out_dtype),
            grid_spec=pltpu.PrefetchScalarGridSpec(
                num_scalar_prefetch=0,
                grid=(grid_m,),
                in_specs=[
                    pl.BlockSpec((tm, d_in), lambda i: (i, 0)),           # x tile
                    pl.BlockSpec((d_in, h_pad), lambda i: (0, 0),
                                 pipeline_mode=pl.Buffered(1)),           # W1^T resident
                    pl.BlockSpec((h_pad, n_pad), lambda i: (0, 0),
                                 pipeline_mode=pl.Buffered(1)),           # W2^T resident
                ],
                out_specs=pl.BlockSpec((tm, n_pad), lambda i: (i, 0)),
            ),
            compiler_params=pltpu.CompilerParams(
                dimension_semantics=("parallel",),
                vmem_limit_bytes=vmem_limit,
            ),
            cost_estimate=cost,
        )(x, w1t_p, w2t_p)
    else:
        # --- H-tiled fallback: stream hidden-dim slabs, f32 accumulator. ---
        th = 512 if h_pad % 512 == 0 else (256 if h_pad % 256 == 0 else 128)
        grid_h = h_pad // th
        out_p = pl.pallas_call(
            mlp_htiled_kernel,
            out_shape=jax.ShapeDtypeStruct((B, n_pad), out_dtype),
            grid_spec=pltpu.PrefetchScalarGridSpec(
                num_scalar_prefetch=0,
                grid=(grid_m, grid_h),
                in_specs=[
                    pl.BlockSpec((tm, d_in), lambda i, j: (i, 0)),
                    pl.BlockSpec((d_in, th), lambda i, j: (0, j)),
                    pl.BlockSpec((th, n_pad), lambda i, j: (j, 0)),
                ],
                out_specs=pl.BlockSpec((tm, n_pad), lambda i, j: (i, 0)),
                scratch_shapes=[pltpu.VMEM((tm, n_pad), jnp.float32)],
            ),
            compiler_params=pltpu.CompilerParams(
                dimension_semantics=("parallel", "arbitrary"),
                vmem_limit_bytes=vmem_limit,
            ),
            cost_estimate=cost,
        )(x, w1t_p, w2t_p)

    return out_p[:, :d_out]


def reference_mlp(x, w1, w2):
    return jnp.tanh(x @ w1.T) @ w2.T


if __name__ == "__main__":
    key = jax.random.PRNGKey(0)
    batch, input_dim, output_dim = 40, 32, 16
    hidden = 2 * input_dim

    k_x, k_w1, k_w2 = jax.random.split(key, 3)
    x = jax.random.normal(k_x, (batch, input_dim), dtype=jnp.float32)
    # nn.Linear weight layout: (out_features, in_features), Kaiming-uniform-ish.
    w1 = jax.random.uniform(k_w1, (hidden, input_dim), dtype=jnp.float32,
                            minval=-1.0 / jnp.sqrt(input_dim),
                            maxval=1.0 / jnp.sqrt(input_dim))
    w2 = jax.random.uniform(k_w2, (output_dim, hidden), dtype=jnp.float32,
                            minval=-1.0 / jnp.sqrt(hidden),
                            maxval=1.0 / jnp.sqrt(hidden))

    # One-time (hoisted) transpose + lane-pad + bf16 cast of the weights.
    w1t_p, w2t_p = prepare_params(w1, w2)
    ref = reference_mlp(x, w1, w2)

    # 1) Fused path, gen-aware default tile (single tile covering the batch).
    out_default = jax.block_until_ready(
        mlp_forward(x, w1t_p, w2t_p, d_out=output_dim))
    # 2) Fused path, multi-step grid with a ragged last tile (B=40, tm=16):
    #    exercises resident single-buffered weights + masked edge writeback.
    out_multi = jax.block_until_ready(
        mlp_forward(x, w1t_p, w2t_p, d_out=output_dim, tm=16))
    # 3) Fused path with the in-kernel row-chunked (MXU/EUP overlap) loop.
    out_chunked = jax.block_until_ready(
        mlp_forward(x, w1t_p, w2t_p, d_out=output_dim, tm=40, chunk_rows=8))
    # 4) H-tiled fallback path (auto-selected when weights exceed ~VMEM/3).
    out_tiled = jax.block_until_ready(
        mlp_forward(x, w1t_p, w2t_p, d_out=output_dim, tm=16, force_tiled=True))

    for out in (out_default, out_multi, out_chunked, out_tiled):
        assert out.shape == (batch, output_dim)
        # bf16 MXU inputs with f32 accumulation: tolerance reflects bf16 rounding.
        assert jnp.allclose(out, ref, atol=2e-2, rtol=2e-2), "mismatch vs reference"

    print("KERNEL_OK")
</pallas_src>

<mosaic_0001>
module attributes {stable_mosaic.version = 11 : i64} {
  func.func @mlp_fused_kernel(%arg0: i32, %arg1: memref<40x32xf32, #tpu.memory_space<vmem>>, %arg2: memref<32x128xbf16, #tpu.memory_space<vmem>>, %arg3: memref<128x128xbf16, #tpu.memory_space<vmem>>, %arg4: memref<40x128xf32, #tpu.memory_space<vmem>>) attributes {dimension_semantics = [#tpu.dimension_semantics<parallel>], iteration_bounds = array<i64: 1>, scalar_prefetch = 0 : i64, scratch_operands = 0 : i64, tpu.core_type = #tpu.core_type<tc>, window_params = [{transform_indices = @transform_0, window_bounds = array<i64: 40, 32>}, {pipeline_mode = #tpu.pipeline_mode<synchronous>, transform_indices = @transform_1, window_bounds = array<i64: 32, 128>}, {pipeline_mode = #tpu.pipeline_mode<synchronous>, transform_indices = @transform_2, window_bounds = array<i64: 128, 128>}, {transform_indices = @transform_3, window_bounds = array<i64: 40, 128>}]} {
    %c0 = arith.constant 0 : index
    %c0_0 = arith.constant 0 : index
    %0 = vector.load %arg2[%c0, %c0_0] : memref<32x128xbf16, #tpu.memory_space<vmem>>, vector<32x128xbf16>
    %c0_1 = arith.constant 0 : index
    %c0_2 = arith.constant 0 : index
    %1 = vector.load %arg3[%c0_1, %c0_2] : memref<128x128xbf16, #tpu.memory_space<vmem>>, vector<128x128xbf16>
    %c0_3 = arith.constant 0 : index
    %c0_4 = arith.constant 0 : index
    %2 = vector.load %arg1[%c0_3, %c0_4] : memref<40x32xf32, #tpu.memory_space<vmem>>, vector<40x32xf32>
    %3 = arith.truncf %2 : vector<40x32xf32> to vector<40x32xbf16>
    %cst = arith.constant dense<0.000000e+00> : vector<40x128xf32>
    %4 = tpu.matmul %3, %0, %cst {dimension_numbers = #tpu.dot_dimension_numbers<[1], [0], [0], [1], [0, 0, 1, 1], [], []>} : vector<40x32xbf16>, vector<32x128xbf16>, vector<40x128xf32> -> vector<40x128xf32>
    %5 = math.tanh %4 : vector<40x128xf32>
    %6 = arith.truncf %5 : vector<40x128xf32> to vector<40x128xbf16>
    %cst_5 = arith.constant dense<0.000000e+00> : vector<40x128xf32>
    %7 = tpu.matmul %6, %1, %cst_5 {dimension_numbers = #tpu.dot_dimension_numbers<[1], [0], [0], [1], [0, 0, 1, 1], [], []>} : vector<40x128xbf16>, vector<128x128xbf16>, vector<40x128xf32> -> vector<40x128xf32>
    %c0_6 = arith.constant 0 : index
    %c0_7 = arith.constant 0 : index
    %8 = vector.load %arg4[%c0_6, %c0_7] : memref<40x128xf32, #tpu.memory_space<vmem>>, vector<40x128xf32>
    tpu.vector_store %arg4[%c0_6, %c0_7], %7 {strides = array<i32>} : memref<40x128xf32, #tpu.memory_space<vmem>>, vector<40x128xf32>,
    return
  }
  func.func @transform_0(%arg0: i32) -> (i32, i32) {
    %c0_i32 = arith.constant 0 : i32
    %c0_i32_0 = arith.constant 0 : i32
    return %arg0, %c0_i32 : i32, i32
  }
  func.func @transform_1(%arg0: i32) -> (i32, i32) {
    %c0_i32 = arith.constant 0 : i32
    %c0_i32_0 = arith.constant 0 : i32
    %c0_i32_1 = arith.constant 0 : i32
    return %c0_i32, %c0_i32_0 : i32, i32
  }
  func.func @transform_2(%arg0: i32) -> (i32, i32) {
    %c0_i32 = arith.constant 0 : i32
    %c0_i32_0 = arith.constant 0 : i32
    %c0_i32_1 = arith.constant 0 : i32
    return %c0_i32, %c0_i32_0 : i32, i32
  }
  func.func @transform_3(%arg0: i32) -> (i32, i32) {
    %c0_i32 = arith.constant 0 : i32
    %c0_i32_0 = arith.constant 0 : i32
    return %arg0, %c0_i32 : i32, i32
  }
}

</mosaic_0001>

<bundles_post_ra>
// kernel: tpu_custom_call.1
= control target key start
LH: loop header
LB: loop body
LE: loop exit
PB: predicated region body
PF: predicated region fallthrough
CT: control target
= control target key end

     0   :  { %8 = vsyncpa [#allocation3], 0  ;;  %s634_s0 = inlined_call_operand.hbm [shape: f32[40,32], index: 0, kind: input, shape index: {}]   ;;  %s635_s1 = inlined_call_operand.hbm [shape: bf16[32,128], index: 1, kind: input, shape index: {}]   ;;  %s636_s2 = inlined_call_operand.hbm [shape: bf16[128,128], index: 2, kind: input, shape index: {}]   ;;  %s637_s3 = inlined_call_operand.hbm [shape: f32[40,128], index: 3, kind: output, shape index: {}]  }
   0x1   :  { %9 = vsyncpa [#allocation6], 0 }
   0x2   :  { %10 = vsyncpa [#allocation4], 0  ;;  %s511_s12 = smov [#allocation5]   ;;  %s417_s16 = scalar_lea.hbm %s635_s1, 256 }
   0x3   :  { %s28_s13 = sshll.u32 %s511_s12, 4  ;;  %p418_p0 = scmp.ne.s32.totalorder %s635_s1, %s417_s16  ;;  %s29_s13 = int_to_ptr.vmem [resolvable:$true] %s28_s13 }
   0x4   :  { %p421_p1 = scmp.lt.u32.totalorder %s417_s16, %s635_s1 }
   0x6   :  { %p423_p2 = pnand %p421_p1, %p418_p0 }
   0x8   :  { %426 = shalt.err (!%p423_p2)
}
   0x9   :  { %s427_s21 = scalar_lea.vmem %s29_s13, 256  ;;  %p432_p4 = scmp.lt.s32.totalorder %s29_s13, %s29_s13 }
   0xa   :  { %p428_p3 = scmp.ne.s32.totalorder %s29_s13, %s427_s21  ;;  %p433_p5 = scmp.lt.s32.totalorder %s427_s21, %s427_s21 }
   0xc   :  { %p434_p6 = por %p433_p5, %p432_p4 }
   0xe   :  { %p435_p7 = pnand %p434_p6, %p428_p3 }
  0x10   :  { %438 = shalt.err (!%p435_p7)
}
  0x11   :  { %s512_s22 = smov 64   ;;  %s513_s23 = smov 4  }
  0x12   :  { %34 = dma.hbm_to_vmem [thread:$0]  %s635_s1, 256, %s29_s13, [#allocation6], %s512_s22, %s512_s22, %s513_s23  }
  0x13   :  { %s514_s26 = smov [#allocation2]   ;;  %s439_s30 = scalar_lea.hbm %s634_s0, 640 }
  0x14   :  { %s16_s27 = sshll.u32 %s514_s26, 4  ;;  %p440_p8 = scmp.ne.s32.totalorder %s634_s0, %s439_s30  ;;  %s17_s27 = int_to_ptr.vmem [resolvable:$true] %s16_s27 }
  0x15   :  { %p443_p9 = scmp.lt.u32.totalorder %s439_s30, %s634_s0 }
  0x17   :  { %p445_p10 = pnand %p443_p9, %p440_p8 }
  0x19   :  { %448 = shalt.err (!%p445_p10)
}
  0x1a   :  { %s449_s8 = scalar_lea.vmem %s17_s27, 640  ;;  %p454_p12 = scmp.lt.s32.totalorder %s17_s27, %s17_s27 }
  0x1b   :  { %p450_p11 = scmp.ne.s32.totalorder %s17_s27, %s449_s8  ;;  %p455_p13 = scmp.lt.s32.totalorder %s449_s8, %s449_s8 }
  0x1d   :  { %p456_p0 = por %p455_p13, %p454_p12 }
  0x1f   :  { %p457_p1 = pnand %p456_p0, %p450_p11 }
  0x21   :  { %460 = shalt.err (!%p457_p1)
}
  0x22   :  { %s515_s1 = smov 128   ;;  %s516_s9 = smov 8  }
  0x23   :  { %22 = dma.hbm_to_vmem [thread:$0]  %s634_s0, 640, %s17_s27, [#allocation3], %s515_s1, %s515_s1, %s516_s9  }
  0x24   :  { %s517_s12 = smov [#allocation7]   ;;  %s461_s16 = scalar_lea.hbm %s636_s2, 1024 }
  0x25   :  { %s40_s13 = sshll.u32 %s517_s12, 4  ;;  %p462_p2 = scmp.ne.s32.totalorder %s636_s2, %s461_s16  ;;  %s41_s13 = int_to_ptr.vmem [resolvable:$true] %s40_s13 }
  0x26   :  { %p465_p3 = scmp.lt.u32.totalorder %s461_s16, %s636_s2 }
  0x28   :  { %p467_p4 = pnand %p465_p3, %p462_p2 }
  0x2a   :  { %470 = shalt.err (!%p467_p4)
}
  0x2b   :  { %s471_s21 = scalar_lea.vmem %s41_s13, 1024  ;;  %p476_p6 = scmp.lt.s32.totalorder %s41_s13, %s41_s13 }
  0x2c   :  { %p472_p5 = scmp.ne.s32.totalorder %s41_s13, %s471_s21  ;;  %p477_p7 = scmp.lt.s32.totalorder %s471_s21, %s471_s21 }
  0x2e   :  { %p478_p8 = por %p477_p7, %p476_p6 }
  0x30   :  { %p479_p9 = pnand %p478_p8, %p472_p5 }
  0x32   :  { %482 = shalt.err (!%p479_p9)
}
  0x33   :  { %46 = dma.hbm_to_vmem [thread:$0]  %s636_s2, 1024, %s41_s13, [#allocation6], %s512_s22, %s512_s22, %s513_s23  }
  0x34   :  { %505 = dma.done.wait [#allocation3], 640  }
  0x35   :  { %506 = vsyncadd [#allocation3], 4294966656 }
  0x36   :  { %507 = dma.done.wait [#allocation6], 1280  }
  0x37   :  { %508 = vsyncadd [#allocation6], 4294966016  ;;  %v518_v0 = vmov 0.0   ;;  %vm519_vm0 = vmmov 0   ;;  %v397_v1 = vld [vmem:[#allocation5] sm:$0xff]   ;;  %v398_v2 = vld [vmem:[#allocation5 + $0x8] sm:$0xff]  }
  0x38   :  { %327 = vmatprep.subr.bf16.mxu0 %v518_v0  ;;  %331 = vmatprep.mubr.msk.bf16.mxu0 %vm519_vm0, %v518_v0  ;;  %v77_v3 = vld [vmem:[#allocation2] sm:$0xff]  ;;  %v78_v4 = vld [vmem:[#allocation2 + $0x8] sm:$0xff]  ;;  %v399_v5 = vld [vmem:[#allocation7] sm:$0xff]   ;;  %vm97_vm1 = vcmask 261120   ;;  %s520_s2 = smov [#allocation8]  }
  0x39   :  { %371 = vmatprep.subr.bf16.mxu1 %v518_v0  ;;  %363 = vmatprep.mubr.msk.bf16.mxu1 %vm519_vm0, %v518_v0  ;;  %v82_v6 = vpack.c.bf16 %v78_v4, %v77_v3  ;;  %v400_v7 = vld [vmem:[#allocation7 + $0x8] sm:$0xff]   ;;  %v79_v8 = vld [vmem:[#allocation2 + $0x10] sm:$0xff]  ;;  %v80_v9 = vld [vmem:[#allocation2 + $0x18] sm:$0xff]  ;;  %s285_s22 = sshll.u32 %s520_s2, 4  ;;  %s286_s22 = int_to_ptr.vmem [resolvable:$true] %s285_s22 }
  0x3a   :  { %328 = vmatpush3.bf16.msra.mxu0 %v397_v1  ;;  %379 = vmatpush3.bf16.msra.mxu1 %v399_v5  ;;  %v83_v10 = vpack.c.bf16 %v80_v9, %v79_v8  ;;  %v401_v11 = vld [vmem:[#allocation7 + $0x10] sm:$0xff]   ;;  %v402_v12 = vld [vmem:[#allocation7 + $0x18] sm:$0xff]   ;;  %v81_v13 = vld [vmem:[#allocation2 + $0x20] sm:$0xff]  ;;  %s483_s23 = scalar_lea.vmem %s286_s22, 640  ;;  %p488_p11 = scmp.lt.s32.totalorder %s286_s22, %s286_s22 }
  0x3b   :  { %329 = vmatprep.subr.bf16.mxu0 %v518_v0  ;;  %372 = vmatprep.subr.bf16.mxu1 %v518_v0  ;;  %v84_v14 = vpack.c.bf16 %v81_v13, %v81_v13  ;;  %v403_v15 = vld [vmem:[#allocation7 + $0x20] sm:$0xff]   ;;  %v404_v16 = vld [vmem:[#allocation7 + $0x28] sm:$0xff]   ;;  %v405_v17 = vld [vmem:[#allocation7 + $0x30] sm:$0xff]   ;;  %p484_p10 = scmp.ne.s32.totalorder %s286_s22, %s483_s23  ;;  %p489_p12 = scmp.lt.s32.totalorder %s483_s23, %s483_s23 }
  0x3c   :  { %v406_v18 = vld [vmem:[#allocation7 + $0x38] sm:$0xff]  }
  0x3d   :  { %p490_p13 = por %p489_p12, %p488_p11 }
  0x3e   :  { %330 = vmatpush3.bf16.msra.mxu0 %v398_v2  ;;  %380 = vmatpush3.bf16.msra.mxu1 %v400_v7 }
  0x3f   :  { %343 = vmatprep.subr.bf16.mxu0 %v518_v0  ;;  %373 = vmatprep.subr.bf16.mxu1 %v518_v0  ;;  %p491_p0 = pnand %p490_p13, %p484_p10 }
  0x41   :  { %332 = vmatmul.mubr.msk.bf16.vlgmr.msra.gmra.mrb[0].mxu0 %vm97_vm1, %v82_v6 }
  0x42   :  { %335 = vmatprep.mubr.msk.bf16.mxu0 %vm519_vm0, %v518_v0  ;;  %344 = vmatpush3.bf16.msra.mxu0 %v399_v5 }
  0x43   :  { %345 = vmatprep.subr.bf16.mxu0 %v518_v0  ;;  %381 = vmatpush3.bf16.msra.mxu1 %v401_v11 }
  0x44   :  { %374 = vmatprep.subr.bf16.mxu1 %v518_v0 }
  0x46   :  { %346 = vmatpush3.bf16.msra.mxu0 %v400_v7 }
  0x47   :  { %347 = vmatprep.subr.bf16.mxu0 %v518_v0  ;;  %382 = vmatpush3.bf16.msra.mxu1 %v402_v12 }
  0x48   :  { %375 = vmatprep.subr.bf16.mxu1 %v518_v0 }
  0x49   :  { %336 = vmatmul.mubr.msk.bf16.gmra.mrb[4].mxu0 %vm97_vm1, %v83_v10 }
  0x4a   :  { %339 = vmatprep.mubr.msk.bf16.mxu0 %vm519_vm0, %v518_v0  ;;  %348 = vmatpush3.bf16.msra.mxu0 %v401_v11 }
  0x4b   :  { %349 = vmatprep.subr.bf16.mxu0 %v518_v0  ;;  %383 = vmatpush3.bf16.msra.mxu1 %v403_v15 }
  0x4c   :  { %376 = vmatprep.subr.bf16.mxu1 %v518_v0 }
  0x4e   :  { %350 = vmatpush3.bf16.msra.mxu0 %v402_v12 }
  0x4f   :  { %351 = vmatprep.subr.bf16.mxu0 %v518_v0  ;;  %384 = vmatpush3.bf16.msra.mxu1 %v404_v16 }
  0x50   :  { %377 = vmatprep.subr.bf16.mxu1 %v518_v0 }
  0x51   :  { %340 = vmatmul.mubr.msk.bf16.gmra.mrb[8].mxu0 %vm97_vm1, %v84_v14 }
  0x52   :  { %359 = vmatprep.mubr.msk.bf16.mxu0 %vm519_vm0, %v518_v0  ;;  %352 = vmatpush3.bf16.msra.mxu0 %v403_v15 }
  0x53   :  { %353 = vmatprep.subr.bf16.mxu0 %v518_v0  ;;  %385 = vmatpush3.bf16.msra.mxu1 %v405_v17 }
  0x54   :  { %378 = vmatprep.subr.bf16.mxu1 %v518_v0 }
  0x56   :  { %354 = vmatpush3.bf16.msra.mxu0 %v404_v16 }
  0x57   :  { %355 = vmatprep.subr.bf16.mxu0 %v518_v0  ;;  %386 = vmatpush3.bf16.msra.mxu1 %v406_v18 }
  0x5a   :  { %356 = vmatpush3.bf16.msra.mxu0 %v405_v17 }
  0x5b   :  { %357 = vmatprep.subr.bf16.mxu0 %v518_v0 }
  0x5e   :  { %358 = vmatpush3.bf16.msra.mxu0 %v406_v18 }
 0x114   :  { %v141_v19 = vpop.f32.mrb[0].mxu0 }
 0x115   :  { %v333_v20 = vpop.f32.mrb[1].mxu0  ;;  %407 = vtanh.f32 %v141_v19 }
 0x116   :  { %v144_v21 = vpop.f32.mrb[2].mxu0 }
 0x117   :  { %409 = vtanh.f32 %v144_v21  ;;  %v334_v22 = vpop.f32.mrb[3].mxu0 }
 0x11c   :  { %v149_v23 = vpop.f32.mrb[4].mxu0 }
 0x11d   :  { %v337_v24 = vpop.f32.mrb[5].mxu0  ;;  %411 = vtanh.f32 %v149_v23 }
 0x11e   :  { %v152_v25 = vpop.f32.mrb[6].mxu0 }
 0x11f   :  { %413 = vtanh.f32 %v152_v25  ;;  %v338_v26 = vpop.f32.mrb[7].mxu0  ;;  %v408_v27 = vpop.eup %407 }
 0x121   :  { %v410_v28 = vpop.eup %409 }
 0x122   :  { %v168_v29 = vpack.c.bf16 %v410_v28, %v408_v27 }
 0x124   :  { %v157_v30 = vpop.f32.mrb[8].mxu0  ;;  %360 = vmatmul.mubr.bf16.vlgmr.msra.gmra.mrb[12].mxu0 %v168_v29 }
 0x125   :  { %415 = vtanh.f32 %v157_v30  ;;  %v341_v31 = vpop.f32.mrb[9].mxu0 }
 0x126   :  { %v160_v32 = vpop.f32.mrb[10].mxu0 }
 0x127   :  { %v342_v33 = vpop.f32.mrb[11].mxu0  ;;  %v412_v34 = vpop.eup %411 }
 0x129   :  { %v414_v35 = vpop.eup %413 }
 0x12a   :  { %v169_v36 = vpack.c.bf16 %v414_v35, %v412_v34 }
 0x12c   :  { %364 = vmatmul.mubr.bf16.vlgmr.msra.gmra.mrb[0].mxu1 %v169_v36 }
 0x12d   :  { %367 = vmatprep.mubr.msk.bf16.mxu1 %vm519_vm0, %v518_v0 }
 0x12f   :  { %v416_v37 = vpop.eup %415 }
 0x130   :  { %v170_v38 = vpack.c.bf16 %v416_v37, %v416_v37 }
 0x134   :  { %368 = vmatmul.mubr.bf16.gmra.mrb[4].mxu1 %v170_v38 }
 0x1f7   :  { %v253_v39 = vpop.f32.mrb[12].mxu0 }
 0x1f8   :  { %275 = vst [vmem:[#allocation8] sm:$0xff] %v253_v39  ;;  %v361_v40 = vpop.f32.mrb[13].mxu0 }
 0x1f9   :  { %v256_v41 = vpop.f32.mrb[14].mxu0 }
 0x1fa   :  { %276 = vst [vmem:[#allocation8 + $0x8] sm:$0xff] %v256_v41  ;;  %v362_v42 = vpop.f32.mrb[15].mxu0 }
 0x1ff   :  { %v261_v43 = vpop.f32.mrb[0].mxu1 }
 0x200   :  { %277 = vst [vmem:[#allocation8 + $0x10] sm:$0xff] %v261_v43  ;;  %v365_v44 = vpop.f32.mrb[1].mxu1 }
 0x201   :  { %v264_v45 = vpop.f32.mrb[2].mxu1 }
 0x202   :  { %278 = vst [vmem:[#allocation8 + $0x18] sm:$0xff] %v264_v45  ;;  %v366_v46 = vpop.f32.mrb[3].mxu1 }
 0x207   :  { %v269_v47 = vpop.f32.mrb[4].mxu1 }
 0x208   :  { %279 = vst [vmem:[#allocation8 + $0x20] sm:$0xff] %v269_v47  ;;  %v369_v48 = vpop.f32.mrb[5].mxu1 }
 0x209   :  { %v272_v49 = vpop.f32.mrb[6].mxu1 }
 0x20a   :  { %494 = shalt.err (!%p491_p0)
}
 0x20b   :  { %s495_s27 = scalar_lea.hbm %s637_s3, 640 }
 0x20c   :  { %p496_p1 = scmp.ne.s32.totalorder %s637_s3, %s495_s27  ;;  %p499_p2 = scmp.lt.u32.totalorder %s495_s27, %s637_s3 }
 0x20e   :  { %p501_p3 = pnand %p499_p2, %p496_p1 }
 0x210   :  { %504 = shalt.err (!%p501_p3)
}
 0x211   :  { %291 = dma.vmem_to_hbm [thread:$0]  %s286_s22, 640, %s637_s3, [#allocation4], %s515_s1, %s515_s1, %s516_s9   ;;  %v370_v50 = vpop.f32.mrb[7].mxu1 }
 0x212   :  { %509 = dma.done.wait [#allocation4], 640  }
 0x213   :  { %510 = vsyncadd [#allocation4], 4294966656 }
 0x214   :  { %295 = vsyncpa [#allocation3], 1 }
 0x215   :  { %296 = vsyncpa [#allocation6], 1 }
 0x216   :  { %297 = vsyncpa [#allocation4], 1 }

</bundles_post_ra>
